<compile_context>
chip_gen: v5e
topology: v5e:2x2
jax: 0.10.0
libtpu: 0.0.40
codegen_flags: <defaults>
</compile_context>

<pallas_src>
import functools

import jax
import jax.numpy as jnp
from jax import lax
from jax.experimental import pallas as pl
from jax.experimental.pallas import tpu as pltpu

LANES = 128            # lane width
SUBLANES = 8           # f32 sublane tile
ROW_CHUNK = 16         # pad rows to a multiple of 16 (safe for bf16 inputs too)
MAX_BLOCK_ROWS = 4096  # 4096*128*4B = 2 MiB per f32 input block
MAX_CORES = 2          # parallel grid axis; both TCs on v7x, harmless elsewhere


def _pow(x, e):
    """x ** e with plain VALU multiplies when e is a small integer.

    Float-exponent pow lowers to exp(e*log(x)) on TPU (extra EUP work); the
    defaults alpha=2, gamma=4 stay entirely on the VPU this way.
    """
    e = float(e)
    if e.is_integer() and 0 <= e <= 8:
        k = int(e)
        if k == 0:
            return jnp.ones_like(x)
        acc = x
        for _ in range(k - 1):
            acc = acc * x
        return acc
    return x ** jnp.float32(e)


def _gfl_kernel(pred_ref, tgt_ref, out_ref, *,
                alpha, gamma, loss_weight, block_rows, total_rows, needs_mask):
    c = pl.program_id(0)   # core-parallel axis
    i = pl.program_id(1)   # sequential reduction axis

    @pl.when(i == 0)
    def _():
        out_ref[...] = jnp.zeros_like(out_ref)

    p = pred_ref[...].astype(jnp.float32)
    t = tgt_ref[...].astype(jnp.float32)

    if needs_mask:
        # Mask rows beyond the logical extent (ragged last block / clamped
        # duplicate blocks on the second core).  Forcing pred=0, target=0
        # makes both branches contribute exactly zero and kills any garbage
        # (incl. NaN) read from an out-of-bounds edge block.
        row0 = (c * pl.num_programs(1) + i) * block_rows
        row_ids = row0 + lax.broadcasted_iota(jnp.int32, (block_rows, LANES), 0)
        valid = row_ids < total_rows
        p = jnp.where(valid, p, jnp.float32(0.0))
        t = jnp.where(valid, t, jnp.float32(0.0))

    eps = jnp.float32(1e-12)
    one = jnp.float32(1.0)

    pos_w = (t == one).astype(jnp.float32)
    neg_w = _pow(one - t, gamma)
    pos_loss = -jnp.log(p + eps) * _pow(one - p, alpha) * pos_w
    neg_loss = -jnp.log(one - p + eps) * _pow(p, alpha) * neg_w
    loss = pos_loss + neg_loss                       # (block_rows, LANES)

    # Per-(sublane, lane) partial sums: pure vreg adds every step; the single
    # expensive cross-lane reduction happens once, outside the kernel.
    out_ref[...] += jnp.sum(
        loss.reshape(block_rows // SUBLANES, SUBLANES, LANES), axis=0)

    if loss_weight != 1.0:
        @pl.when(i == pl.num_programs(1) - 1)
        def _():
            out_ref[...] = out_ref[...] * jnp.float32(loss_weight)


def gaussian_focal_loss_sum(pred, target, *, alpha=2.0, gamma=4.0,
                            loss_weight=1.0):
    """Equivalent of GaussianFocalLoss(alpha, gamma, 'sum', loss_weight)
    (pred, target, reduction='sum').  Returns a scalar f32."""
    assert pred.shape == target.shape

    n = pred.size
    pred_flat = jnp.ravel(pred)
    tgt_flat = jnp.ravel(target)

    # Minimal zero-pad so the flat array reshapes to (rows, 128), rows % 16 == 0.
    # Zero padding (pred=0, target=0) contributes exactly zero loss.
    chunk = ROW_CHUNK * LANES
    if n % chunk != 0:
        pad = chunk - (n % chunk)
        pred_flat = jnp.pad(pred_flat, (0, pad))
        tgt_flat = jnp.pad(tgt_flat, (0, pad))

    rows = pred_flat.shape[0] // LANES
    pred2d = pred_flat.reshape(rows, LANES)
    tgt2d = tgt_flat.reshape(rows, LANES)

    block_rows = min(MAX_BLOCK_ROWS, rows)           # multiple of 16
    steps_total = pl.cdiv(rows, block_rows)
    ncores = MAX_CORES if steps_total >= MAX_CORES else 1
    steps_per_core = pl.cdiv(steps_total, ncores)

    # Mask only when the last block is ragged or the core split over-covers.
    needs_mask = (steps_per_core * ncores != steps_total) or \
                 (rows % block_rows != 0)

    def in_index(c, i):
        # Clamp so any over-coverage steps re-read a valid block (contents are
        # fully masked in-kernel); a no-op on the fast path.
        return (jnp.minimum(c * steps_per_core + i, steps_total - 1), 0)

    kernel = functools.partial(
        _gfl_kernel, alpha=alpha, gamma=gamma, loss_weight=float(loss_weight),
        block_rows=block_rows, total_rows=rows, needs_mask=needs_mask)

    partials = pl.pallas_call(
        kernel,
        out_shape=jax.ShapeDtypeStruct((ncores * SUBLANES, LANES), jnp.float32),
        grid_spec=pltpu.PrefetchScalarGridSpec(
            num_scalar_prefetch=0,
            grid=(ncores, steps_per_core),
            in_specs=[
                pl.BlockSpec((block_rows, LANES), in_index),
                pl.BlockSpec((block_rows, LANES), in_index),
            ],
            out_specs=pl.BlockSpec((SUBLANES, LANES), lambda c, i: (c, 0)),
        ),
        compiler_params=pltpu.CompilerParams(
            dimension_semantics=("parallel", "arbitrary")),
    )(pred2d, tgt2d)

    # Single tiny cross-lane reduction over the (ncores*8, 128) partial sums.
    return jnp.sum(partials)


def _reference(pred, target, alpha=2.0, gamma=4.0, loss_weight=1.0):
    eps = 1e-12
    pred = pred.astype(jnp.float32)
    target = target.astype(jnp.float32)
    pos_w = (target == 1.0).astype(jnp.float32)
    neg_w = (1.0 - target) ** gamma
    pos_loss = -jnp.log(pred + eps) * (1.0 - pred) ** alpha * pos_w
    neg_loss = -jnp.log(1.0 - pred + eps) * (pred ** alpha) * neg_w
    return loss_weight * jnp.sum(pos_loss + neg_loss)


if __name__ == "__main__":
    key = jax.random.PRNGKey(0)
    k1, k2 = jax.random.split(key)

    # NCHW-shaped inputs like a heatmap prediction / gaussian target.
    B, C, H, W = 2, 4, 16, 16
    pred = jax.nn.sigmoid(jax.random.normal(k1, (B, C, H, W), dtype=jnp.float32))
    target = jax.random.uniform(k2, (B, C, H, W), dtype=jnp.float32)
    # Plant a few exact "1" peaks so the positive branch is exercised.
    target = target.at[0, 0, 3, 5].set(1.0).at[1, 2, 8, 8].set(1.0)

    loss = gaussian_focal_loss_sum(pred, target, alpha=2.0, gamma=4.0,
                                   loss_weight=1.0)
    loss = jax.block_until_ready(loss)

    ref = _reference(pred, target)
    assert jnp.allclose(loss, ref, rtol=1e-5, atol=1e-5), (loss, ref)

    print("KERNEL_OK")
</pallas_src>

<mosaic_0001>
module attributes {stable_mosaic.version = 11 : i64} {
  func.func @_gfl_kernel(%arg0: i32, %arg1: i32, %arg2: memref<16x128xf32, #tpu.memory_space<vmem>>, %arg3: memref<16x128xf32, #tpu.memory_space<vmem>>, %arg4: memref<8x128xf32, #tpu.memory_space<vmem>>) attributes {dimension_semantics = [#tpu.dimension_semantics<parallel>, #tpu.dimension_semantics<arbitrary>], iteration_bounds = array<i64: 1, 1>, scalar_prefetch = 0 : i64, scratch_operands = 0 : i64, tpu.core_type = #tpu.core_type<tc>, window_params = [{transform_indices = @transform_0, window_bounds = array<i64: 16, 128>}, {transform_indices = @transform_1, window_bounds = array<i64: 16, 128>}, {transform_indices = @transform_2, window_bounds = array<i64: 8, 128>}]} {
    %c0_i32 = arith.constant 0 : i32
    %0 = arith.cmpi eq, %arg1, %c0_i32 : i32
    %1 = arith.extui %0 : i1 to i32
    %c0_i32_0 = arith.constant 0 : i32
    %2 = arith.cmpi ne, %1, %c0_i32_0 : i32
    scf.if %2 {
      %cst_16 = arith.constant 0.000000e+00 : f32
      %40 = vector.broadcast %cst_16 : f32 to vector<8x128xf32>
      %c0_17 = arith.constant 0 : index
      %c0_18 = arith.constant 0 : index
      %41 = vector.load %arg4[%c0_17, %c0_18] : memref<8x128xf32, #tpu.memory_space<vmem>>, vector<8x128xf32>
      tpu.vector_store %arg4[%c0_17, %c0_18], %40 {strides = array<i32>} : memref<8x128xf32, #tpu.memory_space<vmem>>, vector<8x128xf32>,
    } else {
    }
    %c0 = arith.constant 0 : index
    %c0_1 = arith.constant 0 : index
    %3 = vector.load %arg2[%c0, %c0_1] : memref<16x128xf32, #tpu.memory_space<vmem>>, vector<16x128xf32>
    %c0_2 = arith.constant 0 : index
    %c0_3 = arith.constant 0 : index
    %4 = vector.load %arg3[%c0_2, %c0_3] : memref<16x128xf32, #tpu.memory_space<vmem>>, vector<16x128xf32>
    %cst = arith.constant 1.000000e+00 : f32
    %5 = vector.broadcast %cst : f32 to vector<16x128xf32>
    %6 = arith.cmpf oeq, %4, %5 : vector<16x128xf32>
    %7 = arith.extui %6 : vector<16x128xi1> to vector<16x128xi32>
    %8 = arith.sitofp %7 : vector<16x128xi32> to vector<16x128xf32>
    %cst_4 = arith.constant 1.000000e+00 : f32
    %9 = vector.broadcast %cst_4 : f32 to vector<16x128xf32>
    %10 = arith.subf %9, %4 : vector<16x128xf32>
    %11 = arith.mulf %10, %10 : vector<16x128xf32>
    %12 = arith.mulf %11, %10 : vector<16x128xf32>
    %13 = arith.mulf %12, %10 : vector<16x128xf32>
    %cst_5 = arith.constant 9.99999996E-13 : f32
    %14 = vector.broadcast %cst_5 : f32 to vector<16x128xf32>
    %15 = arith.addf %3, %14 : vector<16x128xf32>
    %16 = math.log %15 : vector<16x128xf32>
    %cst_6 = arith.constant 0.000000e+00 : f32
    %17 = vector.broadcast %cst_6 : f32 to vector<16x128xf32>
    %18 = arith.subf %17, %16 : vector<16x128xf32>
    %cst_7 = arith.constant 1.000000e+00 : f32
    %19 = vector.broadcast %cst_7 : f32 to vector<16x128xf32>
    %20 = arith.subf %19, %3 : vector<16x128xf32>
    %21 = arith.mulf %20, %20 : vector<16x128xf32>
    %22 = arith.mulf %18, %21 : vector<16x128xf32>
    %23 = arith.mulf %22, %8 : vector<16x128xf32>
    %cst_8 = arith.constant 1.000000e+00 : f32
    %24 = vector.broadcast %cst_8 : f32 to vector<16x128xf32>
    %25 = arith.subf %24, %3 : vector<16x128xf32>
    %cst_9 = arith.constant 9.99999996E-13 : f32
    %26 = vector.broadcast %cst_9 : f32 to vector<16x128xf32>
    %27 = arith.addf %25, %26 : vector<16x128xf32>
    %28 = math.log %27 : vector<16x128xf32>
    %cst_10 = arith.constant 0.000000e+00 : f32
    %29 = vector.broadcast %cst_10 : f32 to vector<16x128xf32>
    %30 = arith.subf %29, %28 : vector<16x128xf32>
    %31 = arith.mulf %3, %3 : vector<16x128xf32>
    %32 = arith.mulf %30, %31 : vector<16x128xf32>
    %33 = arith.mulf %32, %13 : vector<16x128xf32>
    %34 = arith.addf %23, %33 : vector<16x128xf32>
    %c0_11 = arith.constant 0 : index
    %c0_12 = arith.constant 0 : index
    %35 = vector.load %arg4[%c0_11, %c0_12] : memref<8x128xf32, #tpu.memory_space<vmem>>, vector<8x128xf32>
    %36 = vector.shape_cast %34 : vector<16x128xf32> to vector<2x8x128xf32>
    %cst_13 = arith.constant dense<0.000000e+00> : vector<8x128xf32>
    %37 = vector.multi_reduction <add>, %36, %cst_13 [0] : vector<2x8x128xf32> to vector<8x128xf32>
    %38 = arith.addf %35, %37 : vector<8x128xf32>
    %c0_14 = arith.constant 0 : index
    %c0_15 = arith.constant 0 : index
    %39 = vector.load %arg4[%c0_14, %c0_15] : memref<8x128xf32, #tpu.memory_space<vmem>>, vector<8x128xf32>
    tpu.vector_store %arg4[%c0_14, %c0_15], %38 {strides = array<i32>} : memref<8x128xf32, #tpu.memory_space<vmem>>, vector<8x128xf32>,
    return
  }
  func.func @transform_0(%arg0: i32, %arg1: i32) -> (i32, i32) {
    %c1_i32 = arith.constant 1 : i32
    %0 = arith.muli %arg0, %c1_i32 : i32
    %1 = arith.addi %0, %arg1 : i32
    %c0_i32 = arith.constant 0 : i32
    %2 = arith.minsi %1, %c0_i32 : i32
    %c0_i32_0 = arith.constant 0 : i32
    %c0_i32_1 = arith.constant 0 : i32
    return %2, %c0_i32_0 : i32, i32
  }
  func.func @transform_1(%arg0: i32, %arg1: i32) -> (i32, i32) {
    %c1_i32 = arith.constant 1 : i32
    %0 = arith.muli %arg0, %c1_i32 : i32
    %1 = arith.addi %0, %arg1 : i32
    %c0_i32 = arith.constant 0 : i32
    %2 = arith.minsi %1, %c0_i32 : i32
    %c0_i32_0 = arith.constant 0 : i32
    %c0_i32_1 = arith.constant 0 : i32
    return %2, %c0_i32_0 : i32, i32
  }
  func.func @transform_2(%arg0: i32, %arg1: i32) -> (i32, i32) {
    %c0_i32 = arith.constant 0 : i32
    %c0_i32_0 = arith.constant 0 : i32
    return %arg0, %c0_i32 : i32, i32
  }
}

</mosaic_0001>

<bundles_post_ra>
// kernel: tpu_custom_call.1
= control target key start
LH: loop header
LB: loop body
LE: loop exit
PB: predicated region body
PF: predicated region fallthrough
CT: control target
= control target key end

     0   :  { %7 = vsyncpa [#allocation3], 0  ;;  %s269_s0 = inlined_call_operand.hbm [shape: f32[16,128], index: 0, kind: input, shape index: {}]   ;;  %s270_s1 = inlined_call_operand.hbm [shape: f32[16,128], index: 1, kind: input, shape index: {}]   ;;  %s271_s2 = inlined_call_operand.hbm [shape: f32[8,128], index: 2, kind: output, shape index: {}]  }
   0x1   :  { %8 = vsyncpa [#allocation6], 0 }
   0x2   :  { %9 = vsyncpa [#allocation4], 0  ;;  %s20_s11 = sshll.u32 %s269_s0, 4  ;;  %s239_s12 = smov [#allocation2]   ;;  %s21_s11 = int_to_ptr.hbm [resolvable:$true] %s20_s11 }
   0x3   :  { %s22_s13 = sshll.u32 %s239_s12, 4  ;;  %s39_s16 = sshll.u32 %s270_s1, 4  ;;  %s23_s13 = int_to_ptr.vmem [resolvable:$true] %s22_s13  ;;  %s40_s16 = int_to_ptr.hbm [resolvable:$true] %s39_s16 }
   0x4   :  { %s240_s17 = smov 128   ;;  %s241_s18 = smov 8  }
   0x5   :  { %28 = dma.hbm_to_vmem [thread:$0]  %s21_s11, 256, %s23_s13, [#allocation3], %s240_s17, %s240_s17, %s241_s18  }
   0x6   :  { %s242_s19 = smov [#allocation5]  }
   0x7   :  { %s41_s20 = sshll.u32 %s242_s19, 4  ;;  %s42_s20 = int_to_ptr.vmem [resolvable:$true] %s41_s20 }
   0x8   :  { %47 = dma.hbm_to_vmem [thread:$0]  %s40_s16, 256, %s42_s20, [#allocation6], %s240_s17, %s240_s17, %s241_s18  }
   0x9   :  { %233 = dma.done.wait [#allocation3], 256  }
   0xa   :  { %234 = vsyncadd [#allocation3], 4294967040 }
   0xb   :  { %235 = dma.done.wait [#allocation6], 256  }
   0xc   :  { %236 = vsyncadd [#allocation6], 4294967040  ;;  %v69_v0 = vld [vmem:[#allocation2] sm:$0xff]  ;;  %v70_v1 = vld [vmem:[#allocation2 + $0x8] sm:$0xff]  ;;  %v243_v28 = vmov 0.0   ;;  %s244_s0 = smov [#allocation7]  }
   0xd   :  { %v71_v2 = vld [vmem:[#allocation5] sm:$0xff]  ;;  %v72_v3 = vld [vmem:[#allocation5 + $0x8] sm:$0xff]  ;;  %v87_v4 = vadd.f32 1e-12, %v69_v0  ;;  %v95_v5 = vsub.f32 1.0, %v69_v0  ;;  %v96_v8 = vsub.f32 1.0, %v70_v1  ;;  %v111_v27 = vmul.f32 %v69_v0, %v69_v0 }
   0xe   :  { %v88_v6 = vadd.f32 1e-12, %v70_v1  ;;  %v79_v7 = vsub.f32 1.0, %v71_v2  ;;  %v80_v9 = vsub.f32 1.0, %v72_v3  ;;  %vm73_vm0 = vcmp.eq.f32.partialorder %v71_v2, 1.0  ;;  %s128_s1 = sshll.u32 %s244_s0, 4  ;;  %s129_s1 = int_to_ptr.vmem [resolvable:$true] %s128_s1 }
   0xf   :  { %153 = vlog2.f32 %v87_v4  ;;  %v103_v10 = vadd.f32 1e-12, %v95_v5  ;;  %v104_v11 = vadd.f32 1e-12, %v96_v8  ;;  %v97_v17 = vmul.f32 %v95_v5, %v95_v5  ;;  %s130_s23 = sshll.u32 %s271_s2, 4  ;;  %s131_s23 = int_to_ptr.hbm [resolvable:$true] %s130_s23 }
  0x10   :  { %155 = vlog2.f32 %v88_v6  ;;  %v81_v12 = vmul.f32 %v79_v7, %v79_v7  ;;  %v82_v13 = vmul.f32 %v80_v9, %v80_v9  ;;  %v98_v20 = vmul.f32 %v96_v8, %v96_v8 }
  0x11   :  { %157 = vlog2.f32 %v103_v10  ;;  %vm74_vm1 = vcmp.eq.f32.partialorder %v72_v3, 1.0  ;;  %v145_v29 = vsel %vm73_vm0, 1.0, %v243_v28  ;;  %v112_v32 = vmul.f32 %v70_v1, %v70_v1 }
  0x12   :  { %159 = vlog2.f32 %v104_v11  ;;  %v83_v18 = vmul.f32 %v81_v12, %v79_v7  ;;  %v84_v22 = vmul.f32 %v82_v13, %v80_v9  ;;  %v146_v33 = vsel %vm74_vm1, 1.0, %v243_v28 }
  0x14   :  { %v85_v34 = vmul.f32 %v83_v18, %v79_v7  ;;  %v86_v37 = vmul.f32 %v84_v22, %v80_v9 }
  0x15   :  { %v154_v14 = vpop.eup %153 }
  0x16   :  { %v156_v15 = vpop.eup %155  ;;  %v90_v16 = vmul.f32 0.6931472, %v154_v14 }
  0x17   :  { %v92_v19 = vmul.f32 0.6931472, %v156_v15  ;;  %v158_v21 = vpop.eup %157 }
  0x18   :  { %v93_v23 = vsub.f32 0.0, %v90_v16  ;;  %v160_v24 = vpop.eup %159  ;;  %v106_v26 = vmul.f32 0.6931472, %v158_v21 }
  0x19   :  { %v94_v25 = vsub.f32 0.0, %v92_v19  ;;  %v108_v31 = vmul.f32 0.6931472, %v160_v24 }
  0x1a   :  { %v99_v30 = vmul.f32 %v97_v17, %v93_v23  ;;  %v109_v36 = vsub.f32 0.0, %v106_v26 }
  0x1b   :  { %v100_v35 = vmul.f32 %v98_v20, %v94_v25  ;;  %v110_v38 = vsub.f32 0.0, %v108_v31 }
  0x1c   :  { %v101_v39 = vmul.f32 %v145_v29, %v99_v30  ;;  %v113_v40 = vmul.f32 %v111_v27, %v109_v36 }
  0x1d   :  { %v102_v41 = vmul.f32 %v146_v33, %v100_v35  ;;  %v114_v42 = vmul.f32 %v112_v32, %v110_v38 }
  0x1e   :  { %v115_v43 = vmul.f32 %v113_v40, %v85_v34 }
  0x1f   :  { %v116_v44 = vmul.f32 %v114_v42, %v86_v37 }
  0x20   :  { %v117_v45 = vadd.f32 %v115_v43, %v101_v39 }
  0x21   :  { %v118_v46 = vadd.f32 %v116_v44, %v102_v41 }
  0x23   :  { %v120_v47 = vadd.f32 %v118_v46, %v117_v45 }
  0x25   :  { %122 = vst [vmem:[#allocation7] sm:$0xff] %v120_v47 }
  0x26   :  { %133 = dma.vmem_to_hbm [thread:$0]  %s129_s1, 128, %s131_s23, [#allocation4]  }
  0x27   :  { %237 = dma.done.wait [#allocation4], 128  }
  0x28   :  { %238 = vsyncadd [#allocation4], 4294967168 }
  0x29   :  { %138 = vsyncpa [#allocation3], 1 }
  0x2a   :  { %139 = vsyncpa [#allocation6], 1 }
  0x2b   :  { %140 = vsyncpa [#allocation4], 1 }

</bundles_post_ra>
